<compile_context>
chip_gen: v6e
topology: v6e:2x2x1
jax: 0.10.0
libtpu: 0.0.40
codegen_flags: <defaults>
</compile_context>

<pallas_src>
import jax
import jax.numpy as jnp
from jax.experimental import pallas as pl
from jax.experimental.pallas import tpu as pltpu


def _make_kernel(batch, block_rows, seq_len):
    inv_len = 1.0 / float(seq_len)

    def kernel(single_ref, multi_ref, out_ref):
        blk = pl.program_id(0)

        # Load once, upcast once, reuse for all reductions (keeps the f32
        # temporaries to ~2x the multi block).
        s = single_ref[...].astype(jnp.float32)   # (TB, V)
        m = multi_ref[...].astype(jnp.float32)    # (TB, L, V)

        # 1 / max(||x||_2, 1e-12)  ==  rsqrt(max(||x||^2, 1e-24)).  Goes to the
        # EUP slot, freeing VPU divide/sqrt issue slots.
        inv_s = jax.lax.rsqrt(
            jnp.maximum(jnp.sum(s * s, axis=-1, keepdims=True), 1e-24))   # (TB, 1)
        inv_m = jax.lax.rsqrt(
            jnp.maximum(jnp.sum(m * m, axis=-1), 1e-24))                  # (TB, L)

        # Batched row dot-products; lane-axis reduce goes to the XLU slot.
        dot = jnp.sum(s[:, None, :] * m, axis=-1)                         # (TB, L)

        # CosineSimilarity(eps=1e-8) of the already-normalized rows: their
        # norms are 1, so its clamp is a no-op for non-degenerate rows.
        term = dot * inv_s * inv_m                                        # (TB, L)

        # Per-batch-row: clamp(sum over len, 1e-12) — matches the module.
        row_sum = jnp.maximum(jnp.sum(term, axis=-1, keepdims=True), 1e-12)  # (TB, 1)

        # Mask rows past the real batch size (last, partial block).
        row_ids = blk * block_rows + jax.lax.broadcasted_iota(
            jnp.int32, (block_rows, 1), 0)
        row_sum = jnp.where(row_ids < batch, row_sum, 0.0)

        # Per-block partial of sum_b(sum_term_b) / len.
        partial = jnp.sum(row_sum, axis=0, keepdims=True) * inv_len          # (1, 1)
        out_ref[...] = jnp.broadcast_to(partial[:, :, None], (1, 1, 128))

    return kernel


def embedding_negative_cosine_similarity_loss(single, multi, *, block_rows=None):
    """single: (B, V); multi: (B, L, V) or (B, S, L, V) with B*S == single.shape[0]."""
    if multi.ndim == 4:
        multi = multi.reshape(-1, multi.shape[2], multi.shape[3])
    assert single.shape[0] == multi.shape[0]
    assert single.shape[-1] == multi.shape[-1]
    B, V = single.shape
    L = multi.shape[1]

    itemsize = max(jnp.dtype(single.dtype).itemsize, jnp.dtype(multi.dtype).itemsize)
    # Per batch row: 2x double-buffered input blocks (HBM dtype) + ~2x f32
    # temporaries for the multi block inside the body.
    bytes_per_row = 2 * (L + 1) * V * itemsize + 2 * L * V * 4

    if block_rows is None:
        # Budget sized for v7x's 64 MiB VMEM (leaves headroom); far under
        # v5e/v6e's 128 MiB physical VMEM.
        budget = 44 * 1024 * 1024
        tb = max(1, budget // bytes_per_row)
    else:
        tb = max(1, int(block_rows))

    if tb >= B:
        tb = B  # Full-dim block: always layout-legal, single grid step.
    elif tb % 8 != 0:
        # Keep the (tb, V) single block sublane-aligned when tb < B.
        tb = (tb // 8) * 8 if tb >= 8 else min(8, B)
        # TODO(synk): for very large L*V (tb forced up here), add a trailing
        # V-tile reduction grid axis with partial sum(s*s)/sum(m*m)/sum(s*m)
        # scratch instead of growing the block.

    num_blocks = pl.cdiv(B, tb)

    # Raise the scoped VMEM limit to cover the chosen blocks; capped so it
    # stays valid on every generation (v5e/v6e 128 MiB, v7x 64 MiB).
    vmem_limit = int(min(100 * 1024 * 1024,
                         max(32 * 1024 * 1024, tb * bytes_per_row + 8 * 1024 * 1024)))

    kernel = _make_kernel(B, tb, L)
    out = pl.pallas_call(
        kernel,
        out_shape=jax.ShapeDtypeStruct((num_blocks, 1, 128), jnp.float32),
        grid_spec=pltpu.PrefetchScalarGridSpec(
            num_scalar_prefetch=0,
            grid=(num_blocks,),
            in_specs=[
                pl.BlockSpec((tb, V), lambda b: (b, 0)),
                pl.BlockSpec((tb, L, V), lambda b: (b, 0, 0)),
            ],
            out_specs=pl.BlockSpec((1, 1, 128), lambda b: (b, 0, 0)),
        ),
        compiler_params=pltpu.CompilerParams(
            dimension_semantics=("parallel",),
            vmem_limit_bytes=vmem_limit,
        ),
    )(single, multi)

    # Tiny final reduction in plain JAX (keeps the grid axis "parallel").
    partials = out[:, 0, 0]                       # (num_blocks,)
    sum_batch = jnp.maximum(jnp.sum(partials), 1e-12)
    # NOTE: the PyTorch module divides the batch-sum by `len` (not batch) —
    # reproduced exactly on purpose.
    return 1.0 - sum_batch / L


def _reference_loss(single, multi):
    # Pure-JAX reference mirroring the PyTorch module.
    if multi.ndim == 4:
        multi = multi.reshape(-1, multi.shape[2], multi.shape[3])
    s = single / jnp.maximum(
        jnp.linalg.norm(single, axis=-1, keepdims=True), 1e-12)
    m = multi / jnp.maximum(
        jnp.linalg.norm(multi, axis=-1, keepdims=True), 1e-12)
    s = s[:, None, :]  # (B, 1, V)
    dot = jnp.sum(s * m, axis=-1)
    denom = (jnp.maximum(jnp.linalg.norm(s, axis=-1), 1e-8)
             * jnp.maximum(jnp.linalg.norm(m, axis=-1), 1e-8))
    term = dot / denom                                   # (B, L)
    L = term.shape[-1]
    sum_term = jnp.clip(term.sum(axis=-1), min=1e-12)
    batch_sim = sum_term / L
    sum_batch = jnp.clip(batch_sim.sum(axis=-1), min=1e-12)
    return 1.0 - sum_batch / L


if __name__ == "__main__":
    key = jax.random.PRNGKey(0)
    k1, k2, k3, k4, k5, k6 = jax.random.split(key, 6)

    # Case 1: small 3D multi, single block (full-dim blocks).
    B, L, V = 2, 8, 128
    single = jax.random.normal(k1, (B, V), dtype=jnp.float32)
    multi = jax.random.normal(k2, (B, L, V), dtype=jnp.float32)
    loss = jax.block_until_ready(
        embedding_negative_cosine_similarity_loss(single, multi))
    ref = _reference_loss(single, multi)
    assert jnp.allclose(loss, ref, atol=1e-5, rtol=1e-5), (loss, ref)

    # Case 2: multi-block grid with a masked (partial) last block.
    B2, L2, V2 = 10, 16, 256
    single2 = jax.random.normal(k3, (B2, V2), dtype=jnp.float32)
    multi2 = jax.random.normal(k4, (B2, L2, V2), dtype=jnp.float32)
    loss2 = jax.block_until_ready(
        embedding_negative_cosine_similarity_loss(single2, multi2, block_rows=8))
    ref2 = _reference_loss(single2, multi2)
    assert jnp.allclose(loss2, ref2, atol=1e-5, rtol=1e-5), (loss2, ref2)

    # Case 3: 4D multi (batch, sample, len, vocab) flattened in the wrapper.
    Bb, Ss, L3, V3 = 2, 2, 8, 128
    single3 = jax.random.normal(k5, (Bb * Ss, V3), dtype=jnp.float32)
    multi3 = jax.random.normal(k6, (Bb, Ss, L3, V3), dtype=jnp.float32)
    loss3 = jax.block_until_ready(
        embedding_negative_cosine_similarity_loss(single3, multi3))
    ref3 = _reference_loss(single3, multi3)
    assert jnp.allclose(loss3, ref3, atol=1e-5, rtol=1e-5), (loss3, ref3)

    print("KERNEL_OK")
</pallas_src>

<mosaic_0001>
module attributes {stable_mosaic.version = 11 : i64} {
  func.func @kernel(%arg0: i32, %arg1: memref<2x128xf32, #tpu.memory_space<vmem>>, %arg2: memref<2x8x128xf32, #tpu.memory_space<vmem>>, %arg3: memref<1x1x128xf32, #tpu.memory_space<vmem>>) attributes {dimension_semantics = [#tpu.dimension_semantics<parallel>], iteration_bounds = array<i64: 1>, scalar_prefetch = 0 : i64, scratch_operands = 0 : i64, tpu.core_type = #tpu.core_type<tc>, window_params = [{transform_indices = @transform_0, window_bounds = array<i64: 2, 128>}, {transform_indices = @transform_1, window_bounds = array<i64: 2, 8, 128>}, {transform_indices = @transform_2, window_bounds = array<i64: 1, 1, 128>}]} {
    %c0 = arith.constant 0 : index
    %c0_0 = arith.constant 0 : index
    %0 = vector.load %arg1[%c0, %c0_0] : memref<2x128xf32, #tpu.memory_space<vmem>>, vector<2x128xf32>
    %c0_1 = arith.constant 0 : index
    %c0_2 = arith.constant 0 : index
    %c0_3 = arith.constant 0 : index
    %1 = vector.load %arg2[%c0_1, %c0_2, %c0_3] : memref<2x8x128xf32, #tpu.memory_space<vmem>>, vector<2x8x128xf32>
    %2 = arith.mulf %0, %0 : vector<2x128xf32>
    %cst = arith.constant dense<0.000000e+00> : vector<2xf32>
    %3 = vector.multi_reduction <add>, %2, %cst [1] : vector<2x128xf32> to vector<2xf32>
    %4 = vector.shape_cast %3 : vector<2xf32> to vector<2x1xf32>
    %cst_4 = arith.constant 1.000000e-24 : f32
    %5 = vector.broadcast %cst_4 : f32 to vector<2x1xf32>
    %6 = arith.maximumf %4, %5 : vector<2x1xf32>
    %7 = math.rsqrt %6 : vector<2x1xf32>
    %8 = arith.mulf %1, %1 : vector<2x8x128xf32>
    %cst_5 = arith.constant dense<0.000000e+00> : vector<2x8xf32>
    %9 = vector.multi_reduction <add>, %8, %cst_5 [2] : vector<2x8x128xf32> to vector<2x8xf32>
    %cst_6 = arith.constant 1.000000e-24 : f32
    %10 = vector.broadcast %cst_6 : f32 to vector<2x8xf32>
    %11 = arith.maximumf %9, %10 : vector<2x8xf32>
    %12 = math.rsqrt %11 : vector<2x8xf32>
    %13 = vector.shape_cast %0 : vector<2x128xf32> to vector<2x1x128xf32>
    %14 = vector.broadcast %13 : vector<2x1x128xf32> to vector<2x8x128xf32>
    %15 = arith.mulf %14, %1 : vector<2x8x128xf32>
    %cst_7 = arith.constant dense<0.000000e+00> : vector<2x8xf32>
    %16 = vector.multi_reduction <add>, %15, %cst_7 [2] : vector<2x8x128xf32> to vector<2x8xf32>
    %17 = vector.broadcast %7 : vector<2x1xf32> to vector<2x8xf32>
    %18 = arith.mulf %16, %17 : vector<2x8xf32>
    %19 = arith.mulf %18, %12 : vector<2x8xf32>
    %cst_8 = arith.constant dense<0.000000e+00> : vector<2xf32>
    %20 = vector.multi_reduction <add>, %19, %cst_8 [1] : vector<2x8xf32> to vector<2xf32>
    %21 = vector.shape_cast %20 : vector<2xf32> to vector<2x1xf32>
    %cst_9 = arith.constant 9.99999996E-13 : f32
    %22 = vector.broadcast %cst_9 : f32 to vector<2x1xf32>
    %23 = arith.maximumf %21, %22 : vector<2x1xf32>
    %c2_i32 = arith.constant 2 : i32
    %24 = arith.muli %arg0, %c2_i32 : i32
    %25 = tpu.iota {dimensions = array<i32: 0>} : vector<2x1xi32>
    %26 = vector.broadcast %24 : i32 to vector<2x1xi32>
    %27 = arith.addi %26, %25 : vector<2x1xi32>
    %c2_i32_10 = arith.constant 2 : i32
    %28 = vector.broadcast %c2_i32_10 : i32 to vector<2x1xi32>
    %29 = arith.cmpi slt, %27, %28 : vector<2x1xi32>
    %cst_11 = arith.constant 0.000000e+00 : f32
    %30 = vector.broadcast %cst_11 : f32 to vector<2x1xf32>
    %31 = arith.select %29, %23, %30 : vector<2x1xi1>, vector<2x1xf32>
    %cst_12 = arith.constant dense<0.000000e+00> : vector<1xf32>
    %32 = vector.multi_reduction <add>, %31, %cst_12 [0] : vector<2x1xf32> to vector<1xf32>
    %33 = vector.shape_cast %32 : vector<1xf32> to vector<1x1xf32>
    %cst_13 = arith.constant 1.250000e-01 : f32
    %34 = vector.broadcast %cst_13 : f32 to vector<1x1xf32>
    %35 = arith.mulf %33, %34 : vector<1x1xf32>
    %36 = vector.shape_cast %35 : vector<1x1xf32> to vector<1x1x1xf32>
    %37 = vector.shape_cast %36 : vector<1x1x1xf32> to vector<1x1x1xf32>
    %38 = vector.broadcast %37 : vector<1x1x1xf32> to vector<1x1x128xf32>
    %c0_14 = arith.constant 0 : index
    %c0_15 = arith.constant 0 : index
    %c0_16 = arith.constant 0 : index
    %39 = vector.load %arg3[%c0_14, %c0_15, %c0_16] : memref<1x1x128xf32, #tpu.memory_space<vmem>>, vector<1x1x128xf32>
    tpu.vector_store %arg3[%c0_14, %c0_15, %c0_16], %38 {strides = array<i32>} : memref<1x1x128xf32, #tpu.memory_space<vmem>>, vector<1x1x128xf32>,
    return
  }
  func.func @transform_0(%arg0: i32) -> (i32, i32) {
    %c0_i32 = arith.constant 0 : i32
    %c0_i32_0 = arith.constant 0 : i32
    return %arg0, %c0_i32 : i32, i32
  }
  func.func @transform_1(%arg0: i32) -> (i32, i32, i32) {
    %c0_i32 = arith.constant 0 : i32
    %c0_i32_0 = arith.constant 0 : i32
    %c0_i32_1 = arith.constant 0 : i32
    return %arg0, %c0_i32, %c0_i32_0 : i32, i32, i32
  }
  func.func @transform_2(%arg0: i32) -> (i32, i32, i32) {
    %c0_i32 = arith.constant 0 : i32
    %c0_i32_0 = arith.constant 0 : i32
    %c0_i32_1 = arith.constant 0 : i32
    return %arg0, %c0_i32, %c0_i32_0 : i32, i32, i32
  }
}

</mosaic_0001>

<bundles_post_ra>
// kernel: tpu_custom_call.1
= control target key start
LH: loop header
LB: loop body
LE: loop exit
PB: predicated region body
PF: predicated region fallthrough
CT: control target
= control target key end

     0   :  { %7 = vsyncpa [#allocation3], 0  ;;  %s291_s0 = inlined_call_operand.hbm [shape: f32[2,128], index: 0, kind: input, shape index: {}]   ;;  %s292_s1 = inlined_call_operand.hbm [shape: f32[2,8,128], index: 1, kind: input, shape index: {}]   ;;  %s293_s2 = inlined_call_operand.hbm [shape: f32[1,1,128], index: 2, kind: output, shape index: {}]  }
   0x1   :  { %8 = vsyncpa [#allocation6], 0 }
   0x2   :  { %9 = vsyncpa [#allocation4], 0  ;;  %s251_s9 = smov [#allocation2]   ;;  %s252_s11 = smov [#allocation5]  }
   0x3   :  { %s16_s10 = sshll.u32 %s251_s9, 4  ;;  %s25_s12 = sshll.u32 %s252_s11, 4  ;;  %s17_s10 = int_to_ptr.vmem [resolvable:$true] %s16_s10  ;;  %s26_s12 = int_to_ptr.vmem [resolvable:$true] %s25_s12 }
   0x4   :  { %s193_s13 = scalar_lea.vmem %s17_s10, 32  ;;  %p198_p1 = scmp.lt.s32.totalorder %s17_s10, %s17_s10 }
   0x5   :  { %p194_p0 = scmp.ne.s32.totalorder %s17_s10, %s193_s13  ;;  %p199_p2 = scmp.lt.s32.totalorder %s193_s13, %s193_s13 }
   0x7   :  { %p200_p3 = por %p199_p2, %p198_p1 }
   0x9   :  { %p201_p4 = pnand %p200_p3, %p194_p0 }
   0xb   :  { %204 = shalt.err (!%p201_p4)
}
   0xc   :  { %19 = dma.hbm_to_vmem [thread:$0]  %s291_s0, 32, %s17_s10, [#allocation3]  }
   0xd   :  { %s213_s16 = scalar_lea.vmem %s26_s12, 256  ;;  %p218_p6 = scmp.lt.s32.totalorder %s26_s12, %s26_s12 }
   0xe   :  { %p214_p5 = scmp.ne.s32.totalorder %s26_s12, %s213_s16  ;;  %p219_p7 = scmp.lt.s32.totalorder %s213_s16, %s213_s16 }
  0x10   :  { %p220_p8 = por %p219_p7, %p218_p6 }
  0x12   :  { %p221_p9 = pnand %p220_p8, %p214_p5 }
  0x14   :  { %224 = shalt.err (!%p221_p9)
}
  0x15   :  { %s253_s17 = smov 128   ;;  %s254_s18 = smov 8  }
  0x16   :  { %31 = dma.hbm_to_vmem [thread:$0]  %s292_s1, 256, %s26_s12, [#allocation6], %s253_s17, %s253_s17, %s254_s18  }
  0x17   :  { %245 = dma.done.wait [#allocation3], 32  }
  0x18   :  { %246 = vsyncadd [#allocation3], 4294967264 }
  0x19   :  { %247 = dma.done.wait [#allocation6], 256  }
  0x1a   :  { %248 = vsyncadd [#allocation6], 4294967040  ;;  %v62_v0 = vlaneseq  ;;  %v255_v1 = vmov 1966171168   ;;  %v38_v6 = vld [vmem:[#allocation2] sm:$0x3] }
  0x1b   :  { %v60_v2 = vunpack.c.l.s4 %v255_v1  ;;  %vm42_vm0 = vcmask 1041408   ;;  %v40_v7 = vld [vmem:[#allocation5 + $0x8] sm:$0xff]  ;;  %v41_v8 = vmul.f32 %v38_v6, %v38_v6  ;;  %v39_v11 = vld [vmem:[#allocation5] sm:$0xff]  ;;  %v256_v22 = vmov 0   ;;  %s257_s0 = smov [#allocation7]  }
  0x1c   :  { %v279_v3 = vshrl.u32 %v62_v0, 7  ;;  %v49_v10 = vmul.f32 %v40_v7, %v40_v7  ;;  %v48_v16 = vmul.f32 %v39_v11, %v39_v11  ;;  %178 = vset.pattern.permute.xlu0 %v256_v22  ;;  %177 = vset.pattern.permute.xlu1 %v256_v22  ;;  %v121_v41 = vand.u32 127, %v62_v0  ;;  %s160_s1 = sshll.u32 %s257_s0, 4  ;;  %s161_s1 = int_to_ptr.vmem [resolvable:$true] %s160_s1 }
  0x1d   :  { %v61_v4 = vunpack.c.0.s8 %v60_v2  ;;  %v43_v13 = vsel %vm42_vm0, %v41_v8, 0.0  ;;  %vm130_vm1 = vcmask 1041409   ;;  %vm133_vm2 = vcmask 58368   ;;  %s225_s21 = scalar_lea.vmem %s161_s1, 16  ;;  %s229_s22 = scalar_lea.vmem %s161_s1, 32 }
  0x1e   :  { %v83_v12 = vsub.s32 0, %v279_v3  ;;  %52 = vadd.xlane.f32.xlu1 %v49_v10  ;;  %44 = vadd.xlane.f32.xlu0 %v43_v13  ;;  %v104_v29 = vsub.s32 1, %v279_v3  ;;  %v124_v42 = vsub.s32 %v121_v41, %v279_v3  ;;  %vm143_vm3 = vcmp.lt.s32.totalorder %v279_v3, 2  ;;  %p226_p10 = scmp.ne.s32.totalorder %s161_s1, %s225_s21  ;;  %p230_p11 = scmp.lt.s32.totalorder %s161_s1, %s161_s1 }
  0x1f   :  { %v64_v5 = vsub.s32 %v61_v4, %v279_v3  ;;  %p231_p12 = scmp.lt.s32.totalorder %s229_s22, %s225_s21 }
  0x21   :  { %v65_v9 = vrot.slane %v38_v6, %v64_v5  ;;  %p232_p13 = por %p231_p12, %p230_p11 }
  0x22   :  { %50 = vadd.xlane.f32.xlu0 %v48_v16 }
  0x23   :  { %v66_v14 = vcombine.high %v65_v9, %v65_v9  ;;  %v73_v15 = vrot.slane %v65_v9, %v64_v5  ;;  %p233_p0 = pnand %p232_p13, %p226_p10 }
  0x25   :  { %v84_v17 = vrot.slane %v73_v15, %v83_v12  ;;  %v80_v18 = vrot.slane %v66_v14, %v64_v5 }
  0x27   :  { %v91_v19 = vmul.f32 %v84_v17, %v39_v11  ;;  %v88_v20 = vrot.slane %v80_v18, %v83_v12 }
  0x29   :  { %93 = vadd.xlane.f32.xlu1 %v91_v19  ;;  %v92_v21 = vmul.f32 %v88_v20, %v40_v7 }
  0x2b   :  { %95 = vadd.xlane.f32.xlu0 %v92_v21 }
  0xa7   :  { %v53_v23 = vpop.xlane.xlu1 %52  ;;  %v45_v24 = vpop.xlane.xlu0 %44 }
  0xa8   :  { %v46_v25 = vmax.f32 %v45_v24, 1e-24  ;;  %v55_v26 = vmax.f32 %v53_v23, 1e-24 }
  0xaa   :  { %179 = vrsqrt.f32 %v46_v25 }
  0xab   :  { %v51_v27 = vpop.xlane.xlu0 %50  ;;  %181 = vrsqrt.f32 %v55_v26 }
  0xac   :  { %v54_v28 = vmax.f32 %v51_v27, 1e-24 }
  0xae   :  { %183 = vrsqrt.f32 %v54_v28 }
  0xb2   :  { %v94_v31 = vpop.xlane.xlu1 %93 }
  0xb4   :  { %v96_v32 = vpop.xlane.xlu0 %95 }
  0xb7   :  { %v180_v30 = vpop.eup %179 }
  0xb8   :  { %v101_v33 = vrot.slane %v180_v30, %v83_v12  ;;  %v105_v34 = vrot.slane %v180_v30, %v104_v29  ;;  %v182_v35 = vpop.eup %181 }
  0xba   :  { %v108_v36 = vmul.f32 %v101_v33, %v94_v31  ;;  %v109_v37 = vmul.f32 %v105_v34, %v96_v32 }
  0xbb   :  { %v184_v38 = vpop.eup %183 }
  0xbc   :  { %v110_v39 = vmul.f32 %v184_v38, %v108_v36  ;;  %v111_v40 = vmul.f32 %v182_v35, %v109_v37 }
  0xbe   :  { %115 = vperm.xlu1 %177, %v110_v39   ;;  %118 = vperm.xlu0 %178, %v111_v40  }
 0x139   :  { %v116_v43 = vpop.permute.xlu1 %115  ;;  %v119_v44 = vpop.permute.xlu0 %118 }
 0x13a   :  { %v125_v45 = vrot.slane %v116_v43, %v124_v42  ;;  %v129_v46 = vrot.slane %v119_v44, %v124_v42 }
 0x13c   :  { %v131_v47 = vsel %vm130_vm1, %v129_v46, %v125_v45 }
 0x13d   :  { %v134_v48 = vsel %vm133_vm2, %v131_v47, 0.0 }
 0x13e   :  { %135 = vadd.xlane.f32.xlu1 %v134_v48 }
 0x1c7   :  { %v136_v49 = vpop.xlane.xlu1 %135 }
 0x1c8   :  { %v137_v50 = vmax.f32 %v136_v49, 1e-12 }
 0x1ca   :  { %v144_v51 = vsel %vm143_vm3, %v137_v50, 0.0 }
 0x1cb   :  { %v145_v52 = vsel %vm42_vm0, %v144_v51, 0.0 }
 0x1cc   :  { %v146_v53 = vrot.slane %v145_v52, 4 }
 0x1ce   :  { %v147_v54 = vadd.f32 %v146_v53, %v145_v52 }
 0x1d0   :  { %v148_v55 = vrot.slane %v147_v54, 2 }
 0x1d2   :  { %v149_v56 = vadd.f32 %v148_v55, %v147_v54 }
 0x1d4   :  { %v150_v57 = vrot.slane %v149_v56, 1 }
 0x1d6   :  { %v151_v58 = vadd.f32 %v150_v57, %v149_v56 }
 0x1d8   :  { %v152_v59 = vmul.f32 0.125, %v151_v58 }
 0x1da   :  { %153 = vst [vmem:[#allocation7] sm:$0x1] %v152_v59 }
 0x1db   :  { %236 = shalt.err (!%p233_p0)
}
 0x1dc   :  { %163 = dma.vmem_to_hbm [thread:$0]  %s161_s1, 16, %s293_s2, [#allocation4]  }
 0x1dd   :  { %249 = dma.done.wait [#allocation4], 16  }
 0x1de   :  { %250 = vsyncadd [#allocation4], 4294967280 }
 0x1df   :  { %167 = vsyncpa [#allocation3], 1 }
 0x1e0   :  { %168 = vsyncpa [#allocation6], 1 }
 0x1e1   :  { %169 = vsyncpa [#allocation4], 1 }

</bundles_post_ra>
